<compile_context>
chip_gen: v6e
topology: v6e:2x2x1
jax: 0.10.0
libtpu: 0.0.40
codegen_flags: <defaults>
</compile_context>

<pallas_src>
import numpy as np
import jax
import jax.numpy as jnp
from jax.experimental import pallas as pl
from jax.experimental.pallas import tpu as pltpu

_BN_EPS = 1e-5
_SQRT_HALF = 0.7071067811865476


def _erf(x):
    # Abramowitz & Stegun 7.1.26 polynomial (max abs err ~1.5e-7); exp and the
    # reciprocal go to the EUP, the rest is cheap VPU mul/add/select.
    a1, a2, a3, a4, a5 = 0.254829592, -0.284496736, 1.421413741, -1.453152027, 1.061405429
    p = 0.3275911
    s = jnp.where(x >= 0.0, 1.0, -1.0)
    ax = jnp.abs(x)
    t = 1.0 / (1.0 + p * ax)
    poly = ((((a5 * t + a4) * t + a3) * t + a2) * t + a1) * t
    return s * (1.0 - poly * jnp.exp(-ax * ax))


def _gelu(x):
    # erf-based GELU, matching nn.GELU() default approximate='none'.
    return 0.5 * x * (1.0 + _erf(x * _SQRT_HALF))


def _softplus(x):
    # Matches torch Softplus(beta=1, threshold=20) to ~1e-7.
    return jnp.where(x > 20.0, x, jnp.log(1.0 + jnp.exp(jnp.minimum(x, 20.0))))


def _batchnorm_train(h, gamma, beta, inv_b):
    # Training-mode BatchNorm1d, one-pass statistics: the two cross-sublane
    # reductions (sum, sum of squares) are independent.
    s1 = jnp.sum(h, axis=0, keepdims=True)
    s2 = jnp.sum(h * h, axis=0, keepdims=True)
    mean = s1 * inv_b
    var = jnp.maximum(s2 * inv_b - mean * mean, 0.0)  # biased batch variance
    return (h - mean) * jax.lax.rsqrt(var + _BN_EPS) * gamma + beta


def qc_mlp_kernel(x_ref,
                  w1_ref, bgb1_ref,      # bgb = rows [bias; gamma; beta]
                  w2_ref, bgb2_ref,
                  whead_ref, bhead_ref,  # fused [wloc | wsca], [bloc | bsca]
                  out_ref):              # packed [B, 2*out_dim] = [mu | softplus(sca)]
    x = x_ref[...]
    inv_b = 1.0 / x.shape[0]

    # --- MLP block 1: Linear -> BN -> GELU ---
    h = jnp.dot(x, w1_ref[...], preferred_element_type=jnp.float32) + bgb1_ref[0:1, :]
    h = _batchnorm_train(h, bgb1_ref[1:2, :], bgb1_ref[2:3, :], inv_b)
    h = _gelu(h)

    # --- MLP final block: Linear -> BN -> GELU ---
    h = jnp.dot(h, w2_ref[...], preferred_element_type=jnp.float32) + bgb2_ref[0:1, :]
    h = _batchnorm_train(h, bgb2_ref[1:2, :], bgb2_ref[2:3, :], inv_b)
    h = _gelu(h)

    # --- fused heads: one matmul for [z_loc | z_sca] ---
    heads = jnp.dot(h, whead_ref[...], preferred_element_type=jnp.float32) + bhead_ref[...]
    out_dim = heads.shape[-1] // 2
    col = jax.lax.broadcasted_iota(jnp.int32, heads.shape, 1)
    # Lower half of the lanes = c_mu (identity), upper half = softplus(c_sca).
    # Single full-width store keeps the output write lane-dense.
    out_ref[...] = jnp.where(col < out_dim, heads, _softplus(heads))


def qc_inference_mlp(x, params):
    B = x.shape[0]
    out_dim = params["whead"].shape[0]  # whead: [out_dim, 2*out_dim]
    args = (
        x,
        params["w1"], params["bgb1"],
        params["w2"], params["bgb2"],
        params["whead"], params["bhead"],
    )
    vmem = pl.BlockSpec(memory_space=pltpu.MemorySpace.VMEM)
    fn = pl.pallas_call(
        qc_mlp_kernel,
        out_shape=jax.ShapeDtypeStruct((B, 2 * out_dim), jnp.float32),
        in_specs=[vmem] * len(args),
        out_specs=vmem,
    )
    packed = fn(*args)
    return packed[:, :out_dim], packed[:, out_dim:]


# ----------------------- pure-JAX reference (for checking) -----------------------

def _ref_forward(x, params):
    out_dim = params["whead"].shape[0]

    def bn(h):
        mean = jnp.mean(h, axis=0, keepdims=True)
        var = jnp.var(h, axis=0, keepdims=True)          # biased, train mode
        return (h - mean) * jax.lax.rsqrt(var + _BN_EPS)  # gamma=1, beta=0 (fresh BN)

    h = x @ params["w1"] + params["bgb1"][0:1, :]
    h = jax.nn.gelu(bn(h), approximate=False)
    h = h @ params["w2"] + params["bgb2"][0:1, :]
    h = jax.nn.gelu(bn(h), approximate=False)
    heads = h @ params["whead"] + params["bhead"]
    return heads[:, :out_dim], jax.nn.softplus(heads[:, out_dim:])


# ----------------------------- parameter construction ----------------------------

def _init_linear(key, fan_in, fan_out):
    # Deterministic stand-in for PyTorch's default Linear init (uniform +-1/sqrt(fan_in)).
    kw, kb = jax.random.split(key)
    bound = 1.0 / np.sqrt(fan_in)
    w = jax.random.uniform(kw, (fan_in, fan_out), jnp.float32, -bound, bound)
    b = jax.random.uniform(kb, (1, fan_out), jnp.float32, -bound, bound)
    return w, b


def make_params(key, in_dim, out_dim, hidden):
    k1, k2, k3, k4 = jax.random.split(key, 4)
    w1, b1 = _init_linear(k1, in_dim, hidden)
    w2, b2 = _init_linear(k2, hidden, out_dim)
    wloc, bloc = _init_linear(k3, out_dim, out_dim)
    wsca, bsca = _init_linear(k4, out_dim, out_dim)

    # Pack (bias, gamma, beta) per BN-bearing layer into one (3, N) array.
    bgb1 = jnp.concatenate(
        [b1, jnp.ones((1, hidden), jnp.float32), jnp.zeros((1, hidden), jnp.float32)], axis=0)
    bgb2 = jnp.concatenate(
        [b2, jnp.ones((1, out_dim), jnp.float32), jnp.zeros((1, out_dim), jnp.float32)], axis=0)

    # Fuse the two head projections: one [out_dim, 2*out_dim] weight + bias.
    whead = jnp.concatenate([wloc, wsca], axis=1)
    bhead = jnp.concatenate([bloc, bsca], axis=1)

    return dict(w1=w1, bgb1=bgb1, w2=w2, bgb2=bgb2, whead=whead, bhead=bhead)


if __name__ == "__main__":
    B, IN_DIM, HIDDEN, OUT_DIM = 8, 32, 64, 16

    key = jax.random.PRNGKey(0)
    kx, kp = jax.random.split(key)
    x = jax.random.normal(kx, (B, IN_DIM), jnp.float32)
    params = make_params(kp, IN_DIM, OUT_DIM, HIDDEN)

    # Host-side equivalent of `assert torch.sum(torch.isnan(x)).item() == 0`.
    assert not np.isnan(np.asarray(x)).any()

    c_mu, c_sca = qc_inference_mlp(x, params)
    jax.block_until_ready((c_mu, c_sca))

    # Host-side equivalent of `assert torch.sum(torch.isinf(c_mu)).item() == 0`.
    assert not np.isinf(np.asarray(c_mu)).any()
    assert c_mu.shape == (B, OUT_DIM) and c_sca.shape == (B, OUT_DIM)
    assert bool(np.all(np.asarray(c_sca) > 0.0))  # Softplus output is positive

    # Correctness vs. a pure-JAX reference of the torch forward pass.
    mu_ref, sca_ref = _ref_forward(x, params)
    np.testing.assert_allclose(np.asarray(c_mu), np.asarray(mu_ref), rtol=5e-4, atol=5e-4)
    np.testing.assert_allclose(np.asarray(c_sca), np.asarray(sca_ref), rtol=5e-4, atol=5e-4)

    print("KERNEL_OK")
</pallas_src>

<mosaic_0001>
module attributes {stable_mosaic.version = 11 : i64} {
  func.func @qc_mlp_kernel(%arg0: memref<8x32xf32, #tpu.memory_space<vmem>>, %arg1: memref<32x64xf32, #tpu.memory_space<vmem>>, %arg2: memref<3x64xf32, #tpu.memory_space<vmem>>, %arg3: memref<64x16xf32, #tpu.memory_space<vmem>>, %arg4: memref<3x16xf32, #tpu.memory_space<vmem>>, %arg5: memref<16x32xf32, #tpu.memory_space<vmem>>, %arg6: memref<1x32xf32, #tpu.memory_space<vmem>>, %arg7: memref<8x32xf32, #tpu.memory_space<vmem>>) attributes {dimension_semantics = [], scalar_prefetch = 0 : i64, scratch_operands = 0 : i64, tpu.core_type = #tpu.core_type<tc>} {
    %c0 = arith.constant 0 : index
    %c0_0 = arith.constant 0 : index
    %0 = vector.load %arg0[%c0, %c0_0] : memref<8x32xf32, #tpu.memory_space<vmem>>, vector<8x32xf32>
    %c0_1 = arith.constant 0 : index
    %c0_2 = arith.constant 0 : index
    %1 = vector.load %arg1[%c0_1, %c0_2] : memref<32x64xf32, #tpu.memory_space<vmem>>, vector<32x64xf32>
    %cst = arith.constant dense<0.000000e+00> : vector<8x64xf32>
    %2 = tpu.matmul %0, %1, %cst {dimension_numbers = #tpu.dot_dimension_numbers<[1], [0], [0], [1], [0, 0, 1, 1], [], []>} : vector<8x32xf32>, vector<32x64xf32>, vector<8x64xf32> -> vector<8x64xf32>
    %c0_3 = arith.constant 0 : index
    %c0_4 = arith.constant 0 : index
    %3 = vector.load %arg2[%c0_3, %c0_4] : memref<3x64xf32, #tpu.memory_space<vmem>>, vector<1x64xf32>
    %4 = vector.broadcast %3 : vector<1x64xf32> to vector<8x64xf32>
    %5 = arith.addf %2, %4 : vector<8x64xf32>
    %c1 = arith.constant 1 : index
    %c0_5 = arith.constant 0 : index
    %6 = vector.load %arg2[%c1, %c0_5] : memref<3x64xf32, #tpu.memory_space<vmem>>, vector<1x64xf32>
    %c2 = arith.constant 2 : index
    %c0_6 = arith.constant 0 : index
    %7 = vector.load %arg2[%c2, %c0_6] : memref<3x64xf32, #tpu.memory_space<vmem>>, vector<1x64xf32>
    %cst_7 = arith.constant dense<0.000000e+00> : vector<64xf32>
    %8 = vector.multi_reduction <add>, %5, %cst_7 [0] : vector<8x64xf32> to vector<64xf32>
    %9 = vector.shape_cast %8 : vector<64xf32> to vector<1x64xf32>
    %10 = arith.mulf %5, %5 : vector<8x64xf32>
    %cst_8 = arith.constant dense<0.000000e+00> : vector<64xf32>
    %11 = vector.multi_reduction <add>, %10, %cst_8 [0] : vector<8x64xf32> to vector<64xf32>
    %12 = vector.shape_cast %11 : vector<64xf32> to vector<1x64xf32>
    %cst_9 = arith.constant 1.250000e-01 : f32
    %13 = vector.broadcast %cst_9 : f32 to vector<1x64xf32>
    %14 = arith.mulf %9, %13 : vector<1x64xf32>
    %cst_10 = arith.constant 1.250000e-01 : f32
    %15 = vector.broadcast %cst_10 : f32 to vector<1x64xf32>
    %16 = arith.mulf %12, %15 : vector<1x64xf32>
    %17 = arith.mulf %14, %14 : vector<1x64xf32>
    %18 = arith.subf %16, %17 : vector<1x64xf32>
    %cst_11 = arith.constant 0.000000e+00 : f32
    %19 = vector.broadcast %cst_11 : f32 to vector<1x64xf32>
    %20 = arith.maximumf %18, %19 : vector<1x64xf32>
    %21 = vector.broadcast %14 : vector<1x64xf32> to vector<8x64xf32>
    %22 = arith.subf %5, %21 : vector<8x64xf32>
    %cst_12 = arith.constant 9.99999974E-6 : f32
    %23 = vector.broadcast %cst_12 : f32 to vector<1x64xf32>
    %24 = arith.addf %20, %23 : vector<1x64xf32>
    %25 = math.rsqrt %24 : vector<1x64xf32>
    %26 = vector.broadcast %25 : vector<1x64xf32> to vector<8x64xf32>
    %27 = arith.mulf %22, %26 : vector<8x64xf32>
    %28 = vector.broadcast %6 : vector<1x64xf32> to vector<8x64xf32>
    %29 = arith.mulf %27, %28 : vector<8x64xf32>
    %30 = vector.broadcast %7 : vector<1x64xf32> to vector<8x64xf32>
    %31 = arith.addf %29, %30 : vector<8x64xf32>
    %cst_13 = arith.constant 5.000000e-01 : f32
    %32 = vector.broadcast %cst_13 : f32 to vector<8x64xf32>
    %33 = arith.mulf %32, %31 : vector<8x64xf32>
    %cst_14 = arith.constant 0.707106769 : f32
    %34 = vector.broadcast %cst_14 : f32 to vector<8x64xf32>
    %35 = arith.mulf %31, %34 : vector<8x64xf32>
    %cst_15 = arith.constant 0.000000e+00 : f32
    %36 = vector.broadcast %cst_15 : f32 to vector<8x64xf32>
    %37 = arith.cmpf oge, %35, %36 : vector<8x64xf32>
    %cst_16 = arith.constant 1.000000e+00 : f32
    %cst_17 = arith.constant -1.000000e+00 : f32
    %38 = vector.broadcast %cst_16 : f32 to vector<8x64xf32>
    %39 = vector.broadcast %cst_17 : f32 to vector<8x64xf32>
    %40 = arith.select %37, %38, %39 : vector<8x64xi1>, vector<8x64xf32>
    %41 = math.absf %35 : vector<8x64xf32>
    %cst_18 = arith.constant 0.327591091 : f32
    %42 = vector.broadcast %cst_18 : f32 to vector<8x64xf32>
    %43 = arith.mulf %42, %41 : vector<8x64xf32>
    %cst_19 = arith.constant 1.000000e+00 : f32
    %44 = vector.broadcast %cst_19 : f32 to vector<8x64xf32>
    %45 = arith.addf %44, %43 : vector<8x64xf32>
    %cst_20 = arith.constant 1.000000e+00 : f32
    %46 = vector.broadcast %cst_20 : f32 to vector<8x64xf32>
    %47 = arith.divf %46, %45 : vector<8x64xf32>
    %cst_21 = arith.constant 1.06140542 : f32
    %48 = vector.broadcast %cst_21 : f32 to vector<8x64xf32>
    %49 = arith.mulf %48, %47 : vector<8x64xf32>
    %cst_22 = arith.constant -1.45315206 : f32
    %50 = vector.broadcast %cst_22 : f32 to vector<8x64xf32>
    %51 = arith.addf %49, %50 : vector<8x64xf32>
    %52 = arith.mulf %51, %47 : vector<8x64xf32>
    %cst_23 = arith.constant 1.42141378 : f32
    %53 = vector.broadcast %cst_23 : f32 to vector<8x64xf32>
    %54 = arith.addf %52, %53 : vector<8x64xf32>
    %55 = arith.mulf %54, %47 : vector<8x64xf32>
    %cst_24 = arith.constant -0.284496725 : f32
    %56 = vector.broadcast %cst_24 : f32 to vector<8x64xf32>
    %57 = arith.addf %55, %56 : vector<8x64xf32>
    %58 = arith.mulf %57, %47 : vector<8x64xf32>
    %cst_25 = arith.constant 0.254829586 : f32
    %59 = vector.broadcast %cst_25 : f32 to vector<8x64xf32>
    %60 = arith.addf %58, %59 : vector<8x64xf32>
    %61 = arith.mulf %60, %47 : vector<8x64xf32>
    %cst_26 = arith.constant 0.000000e+00 : f32
    %62 = vector.broadcast %cst_26 : f32 to vector<8x64xf32>
    %63 = arith.subf %62, %41 : vector<8x64xf32>
    %64 = arith.mulf %63, %41 : vector<8x64xf32>
    %65 = math.exp %64 : vector<8x64xf32>
    %66 = arith.mulf %61, %65 : vector<8x64xf32>
    %cst_27 = arith.constant 1.000000e+00 : f32
    %67 = vector.broadcast %cst_27 : f32 to vector<8x64xf32>
    %68 = arith.subf %67, %66 : vector<8x64xf32>
    %69 = arith.mulf %40, %68 : vector<8x64xf32>
    %cst_28 = arith.constant 1.000000e+00 : f32
    %70 = vector.broadcast %cst_28 : f32 to vector<8x64xf32>
    %71 = arith.addf %70, %69 : vector<8x64xf32>
    %72 = arith.mulf %33, %71 : vector<8x64xf32>
    %c0_29 = arith.constant 0 : index
    %c0_30 = arith.constant 0 : index
    %73 = vector.load %arg3[%c0_29, %c0_30] : memref<64x16xf32, #tpu.memory_space<vmem>>, vector<64x16xf32>
    %cst_31 = arith.constant dense<0.000000e+00> : vector<8x16xf32>
    %74 = tpu.matmul %72, %73, %cst_31 {dimension_numbers = #tpu.dot_dimension_numbers<[1], [0], [0], [1], [0, 0, 1, 1], [], []>} : vector<8x64xf32>, vector<64x16xf32>, vector<8x16xf32> -> vector<8x16xf32>
    %c0_32 = arith.constant 0 : index
    %c0_33 = arith.constant 0 : index
    %75 = vector.load %arg4[%c0_32, %c0_33] : memref<3x16xf32, #tpu.memory_space<vmem>>, vector<1x16xf32>
    %76 = vector.broadcast %75 : vector<1x16xf32> to vector<8x16xf32>
    %77 = arith.addf %74, %76 : vector<8x16xf32>
    %c1_34 = arith.constant 1 : index
    %c0_35 = arith.constant 0 : index
    %78 = vector.load %arg4[%c1_34, %c0_35] : memref<3x16xf32, #tpu.memory_space<vmem>>, vector<1x16xf32>
    %c2_36 = arith.constant 2 : index
    %c0_37 = arith.constant 0 : index
    %79 = vector.load %arg4[%c2_36, %c0_37] : memref<3x16xf32, #tpu.memory_space<vmem>>, vector<1x16xf32>
    %cst_38 = arith.constant dense<0.000000e+00> : vector<16xf32>
    %80 = vector.multi_reduction <add>, %77, %cst_38 [0] : vector<8x16xf32> to vector<16xf32>
    %81 = vector.shape_cast %80 : vector<16xf32> to vector<1x16xf32>
    %82 = arith.mulf %77, %77 : vector<8x16xf32>
    %cst_39 = arith.constant dense<0.000000e+00> : vector<16xf32>
    %83 = vector.multi_reduction <add>, %82, %cst_39 [0] : vector<8x16xf32> to vector<16xf32>
    %84 = vector.shape_cast %83 : vector<16xf32> to vector<1x16xf32>
    %cst_40 = arith.constant 1.250000e-01 : f32
    %85 = vector.broadcast %cst_40 : f32 to vector<1x16xf32>
    %86 = arith.mulf %81, %85 : vector<1x16xf32>
    %cst_41 = arith.constant 1.250000e-01 : f32
    %87 = vector.broadcast %cst_41 : f32 to vector<1x16xf32>
    %88 = arith.mulf %84, %87 : vector<1x16xf32>
    %89 = arith.mulf %86, %86 : vector<1x16xf32>
    %90 = arith.subf %88, %89 : vector<1x16xf32>
    %cst_42 = arith.constant 0.000000e+00 : f32
    %91 = vector.broadcast %cst_42 : f32 to vector<1x16xf32>
    %92 = arith.maximumf %90, %91 : vector<1x16xf32>
    %93 = vector.broadcast %86 : vector<1x16xf32> to vector<8x16xf32>
    %94 = arith.subf %77, %93 : vector<8x16xf32>
    %cst_43 = arith.constant 9.99999974E-6 : f32
    %95 = vector.broadcast %cst_43 : f32 to vector<1x16xf32>
    %96 = arith.addf %92, %95 : vector<1x16xf32>
    %97 = math.rsqrt %96 : vector<1x16xf32>
    %98 = vector.broadcast %97 : vector<1x16xf32> to vector<8x16xf32>
    %99 = arith.mulf %94, %98 : vector<8x16xf32>
    %100 = vector.broadcast %78 : vector<1x16xf32> to vector<8x16xf32>
    %101 = arith.mulf %99, %100 : vector<8x16xf32>
    %102 = vector.broadcast %79 : vector<1x16xf32> to vector<8x16xf32>
    %103 = arith.addf %101, %102 : vector<8x16xf32>
    %cst_44 = arith.constant 5.000000e-01 : f32
    %104 = vector.broadcast %cst_44 : f32 to vector<8x16xf32>
    %105 = arith.mulf %104, %103 : vector<8x16xf32>
    %cst_45 = arith.constant 0.707106769 : f32
    %106 = vector.broadcast %cst_45 : f32 to vector<8x16xf32>
    %107 = arith.mulf %103, %106 : vector<8x16xf32>
    %cst_46 = arith.constant 0.000000e+00 : f32
    %108 = vector.broadcast %cst_46 : f32 to vector<8x16xf32>
    %109 = arith.cmpf oge, %107, %108 : vector<8x16xf32>
    %cst_47 = arith.constant 1.000000e+00 : f32
    %cst_48 = arith.constant -1.000000e+00 : f32
    %110 = vector.broadcast %cst_47 : f32 to vector<8x16xf32>
    %111 = vector.broadcast %cst_48 : f32 to vector<8x16xf32>
    %112 = arith.select %109, %110, %111 : vector<8x16xi1>, vector<8x16xf32>
    %113 = math.absf %107 : vector<8x16xf32>
    %cst_49 = arith.constant 0.327591091 : f32
    %114 = vector.broadcast %cst_49 : f32 to vector<8x16xf32>
    %115 = arith.mulf %114, %113 : vector<8x16xf32>
    %cst_50 = arith.constant 1.000000e+00 : f32
    %116 = vector.broadcast %cst_50 : f32 to vector<8x16xf32>
    %117 = arith.addf %116, %115 : vector<8x16xf32>
    %cst_51 = arith.constant 1.000000e+00 : f32
    %118 = vector.broadcast %cst_51 : f32 to vector<8x16xf32>
    %119 = arith.divf %118, %117 : vector<8x16xf32>
    %cst_52 = arith.constant 1.06140542 : f32
    %120 = vector.broadcast %cst_52 : f32 to vector<8x16xf32>
    %121 = arith.mulf %120, %119 : vector<8x16xf32>
    %cst_53 = arith.constant -1.45315206 : f32
    %122 = vector.broadcast %cst_53 : f32 to vector<8x16xf32>
    %123 = arith.addf %121, %122 : vector<8x16xf32>
    %124 = arith.mulf %123, %119 : vector<8x16xf32>
    %cst_54 = arith.constant 1.42141378 : f32
    %125 = vector.broadcast %cst_54 : f32 to vector<8x16xf32>
    %126 = arith.addf %124, %125 : vector<8x16xf32>
    %127 = arith.mulf %126, %119 : vector<8x16xf32>
    %cst_55 = arith.constant -0.284496725 : f32
    %128 = vector.broadcast %cst_55 : f32 to vector<8x16xf32>
    %129 = arith.addf %127, %128 : vector<8x16xf32>
    %130 = arith.mulf %129, %119 : vector<8x16xf32>
    %cst_56 = arith.constant 0.254829586 : f32
    %131 = vector.broadcast %cst_56 : f32 to vector<8x16xf32>
    %132 = arith.addf %130, %131 : vector<8x16xf32>
    %133 = arith.mulf %132, %119 : vector<8x16xf32>
    %cst_57 = arith.constant 0.000000e+00 : f32
    %134 = vector.broadcast %cst_57 : f32 to vector<8x16xf32>
    %135 = arith.subf %134, %113 : vector<8x16xf32>
    %136 = arith.mulf %135, %113 : vector<8x16xf32>
    %137 = math.exp %136 : vector<8x16xf32>
    %138 = arith.mulf %133, %137 : vector<8x16xf32>
    %cst_58 = arith.constant 1.000000e+00 : f32
    %139 = vector.broadcast %cst_58 : f32 to vector<8x16xf32>
    %140 = arith.subf %139, %138 : vector<8x16xf32>
    %141 = arith.mulf %112, %140 : vector<8x16xf32>
    %cst_59 = arith.constant 1.000000e+00 : f32
    %142 = vector.broadcast %cst_59 : f32 to vector<8x16xf32>
    %143 = arith.addf %142, %141 : vector<8x16xf32>
    %144 = arith.mulf %105, %143 : vector<8x16xf32>
    %c0_60 = arith.constant 0 : index
    %c0_61 = arith.constant 0 : index
    %145 = vector.load %arg5[%c0_60, %c0_61] : memref<16x32xf32, #tpu.memory_space<vmem>>, vector<16x32xf32>
    %cst_62 = arith.constant dense<0.000000e+00> : vector<8x32xf32>
    %146 = tpu.matmul %144, %145, %cst_62 {dimension_numbers = #tpu.dot_dimension_numbers<[1], [0], [0], [1], [0, 0, 1, 1], [], []>} : vector<8x16xf32>, vector<16x32xf32>, vector<8x32xf32> -> vector<8x32xf32>
    %c0_63 = arith.constant 0 : index
    %c0_64 = arith.constant 0 : index
    %147 = vector.load %arg6[%c0_63, %c0_64] : memref<1x32xf32, #tpu.memory_space<vmem>>, vector<1x32xf32>
    %148 = vector.broadcast %147 : vector<1x32xf32> to vector<8x32xf32>
    %149 = arith.addf %146, %148 : vector<8x32xf32>
    %150 = tpu.iota {dimensions = array<i32: 1>} : vector<8x32xi32>
    %c16_i32 = arith.constant 16 : i32
    %151 = vector.broadcast %c16_i32 : i32 to vector<8x32xi32>
    %152 = arith.cmpi slt, %150, %151 : vector<8x32xi32>
    %cst_65 = arith.constant 2.000000e+01 : f32
    %153 = vector.broadcast %cst_65 : f32 to vector<8x32xf32>
    %154 = arith.cmpf ogt, %149, %153 : vector<8x32xf32>
    %cst_66 = arith.constant 2.000000e+01 : f32
    %155 = vector.broadcast %cst_66 : f32 to vector<8x32xf32>
    %156 = arith.minimumf %149, %155 : vector<8x32xf32>
    %157 = math.exp %156 : vector<8x32xf32>
    %cst_67 = arith.constant 1.000000e+00 : f32
    %158 = vector.broadcast %cst_67 : f32 to vector<8x32xf32>
    %159 = arith.addf %158, %157 : vector<8x32xf32>
    %160 = math.log %159 : vector<8x32xf32>
    %161 = arith.select %154, %149, %160 : vector<8x32xi1>, vector<8x32xf32>
    %162 = arith.select %152, %149, %161 : vector<8x32xi1>, vector<8x32xf32>
    %c0_68 = arith.constant 0 : index
    %c0_69 = arith.constant 0 : index
    %163 = vector.load %arg7[%c0_68, %c0_69] : memref<8x32xf32, #tpu.memory_space<vmem>>, vector<8x32xf32>
    tpu.vector_store %arg7[%c0_68, %c0_69], %162 {strides = array<i32>} : memref<8x32xf32, #tpu.memory_space<vmem>>, vector<8x32xf32>,
    return
  }
}

</mosaic_0001>

<bundles_post_ra>
// kernel: tpu_custom_call.1
= control target key start
LH: loop header
LB: loop body
LE: loop exit
PB: predicated region body
PF: predicated region fallthrough
CT: control target
= control target key end

     0   :  { %v540_v1 = vmov 0.0   ;;  %vm541_vm0 = vmmov 0   ;;  %s683_s0 = inlined_call_operand.vmem [shape: f32[8,32], index: 0, kind: input, shape index: {}]   ;;  %s684_s1 = inlined_call_operand.vmem [shape: f32[32,64], index: 1, kind: input, shape index: {}]   ;;  %s685_s2 = inlined_call_operand.vmem [shape: f32[3,64], index: 2, kind: input, shape index: {}]   ;;  %s686_s3 = inlined_call_operand.vmem [shape: f32[64,16], index: 3, kind: input, shape index: {}]   ;;  %s687_s4 = inlined_call_operand.vmem [shape: f32[3,16], index: 4, kind: input, shape index: {}]   ;;  %s688_s5 = inlined_call_operand.vmem [shape: f32[16,32], index: 5, kind: input, shape index: {}]   ;;  %s689_s6 = inlined_call_operand.vmem [shape: f32[1,32], index: 6, kind: input, shape index: {}]   ;;  %s690_s7 = inlined_call_operand.hbm [shape: f32[8,32], index: 7, kind: output, shape index: {}]  }
   0x1   :  { %v31_v0 = vld [vmem:[%s684_s1 + $0x18] sm:$0xff]  ;;  %461 = vmatprep.subr.mxu0 %v540_v1  ;;  %v30_v2 = vld [vmem:[%s684_s1 + $0x10] sm:$0xff]  ;;  %469 = vmatprep.mubr.msk.f32.mxu0 %vm541_vm0, %v540_v1 }
   0x2   :  { %462 = vmatpush3.msra.mxu0 %v31_v0  ;;  %472 = vmatprep.subr.mxu1 %v540_v1 }
   0x3   :  { %12 = vsyncpa [#allocation3], 0  ;;  %463 = vmatprep.subr.mxu0 %v540_v1  ;;  %v29_v3 = vld [vmem:[%s684_s1 + $0x8] sm:$0xff]  ;;  %488 = vmatprep.mubr.msk.f32.mxu1 %vm541_vm0, %v540_v1  ;;  %v28_v4 = vld [vmem:[%s684_s1] sm:$0xff]  ;;  %vm37_vm1 = vcmask 261120   ;;  %vm113_vm2 = vcmask 523264  }
   0x4   :  { %464 = vmatpush3.msra.mxu0 %v30_v2  ;;  %v27_v5 = vld [vmem:[%s683_s0] sm:$0xff]  ;;  %v182_v6 = vld [vmem:[%s686_s3 + $0x38] sm:$0xff]  ;;  %v181_v7 = vld [vmem:[%s686_s3 + $0x30] sm:$0xff]  ;;  %vm263_vm4 = vcmask 130048   ;;  %s543_s14 = smov [#allocation2]  }
   0x5   :  { %465 = vmatprep.subr.mxu0 %v540_v1  ;;  %473 = vmatpush3.msra.mxu1 %v182_v6  ;;  %v180_v8 = vld [vmem:[%s686_s3 + $0x28] sm:$0xff]  ;;  %v179_v9 = vld [vmem:[%s686_s3 + $0x20] sm:$0xff]  ;;  %v178_v10 = vld [vmem:[%s686_s3 + $0x18] sm:$0xff]  ;;  %s426_s15 = sshll.u32 %s543_s14, 4  ;;  %s427_s15 = int_to_ptr.vmem [resolvable:$true] %s426_s15 }
   0x6   :  { %466 = vmatpush3.msra.mxu0 %v29_v3  ;;  %474 = vmatprep.subr.mxu1 %v540_v1  ;;  %v177_v11 = vld [vmem:[%s686_s3 + $0x10] sm:$0xff]  ;;  %v176_v12 = vld [vmem:[%s686_s3 + $0x8] sm:$0xff]  ;;  %v175_v13 = vld [vmem:[%s686_s3] sm:$0xff]  ;;  %v542_v3 = vmov -1.0   ;;  %p523_p1 = scmp.lt.s32.totalorder %s427_s15, %s427_s15 }
   0x7   :  { %467 = vmatprep.subr.mxu0 %v540_v1  ;;  %475 = vmatpush3.msra.mxu1 %v181_v7  ;;  %v434_v14 = vld [vmem:[%s685_s2] ss:$0 sm:$0xff]  ;;  %v436_v41 = vld [vmem:[%s685_s2 + $0x1] ss:$0 sm:$0xff]  ;;  %v437_v43 = vld [vmem:[%s685_s2 + $0x2] ss:$0 sm:$0xff] }
   0x8   :  { %468 = vmatpush3.msra.mxu0 %v28_v4  ;;  %476 = vmatprep.subr.mxu1 %v540_v1 }
   0x9   :  { %470 = vmatmul.mubr.msk.f32.vlgmr.msra.gmra.mxu0 %vm37_vm1, %v27_v5  ;;  %491 = vmatprep.subr.mxu0 %v540_v1 }
   0xa   :  { %495 = vmatprep.mubr.msk.f32.mxu0 %vm541_vm0, %v540_v1  ;;  %477 = vmatpush3.msra.mxu1 %v180_v8 }
   0xb   :  { %478 = vmatprep.subr.mxu1 %v540_v1 }
   0xc   :  { %479 = vmatpush3.msra.mxu1 %v179_v9  ;;  %v326_v9 = vld [vmem:[%s688_s5 + $0x8] sm:$0xff] }
   0xd   :  { %480 = vmatprep.subr.mxu1 %v540_v1  ;;  %492 = vmatpush3.msra.mxu0 %v326_v9 }
   0xe   :  { %481 = vmatpush3.msra.mxu1 %v178_v10  ;;  %v325_v10 = vld [vmem:[%s688_s5] sm:$0xff]  ;;  %493 = vmatprep.subr.mxu0 %v540_v1 }
   0xf   :  { %482 = vmatprep.subr.mxu1 %v540_v1  ;;  %494 = vmatpush3.msra.mxu0 %v325_v10 }
  0x10   :  { %483 = vmatpush3.msra.mxu1 %v177_v11  ;;  %v438_v11 = vld [vmem:[%s687_s4] ss:$0 sm:$0xff] }
  0x11   :  { %484 = vmatprep.subr.mxu1 %v540_v1 }
  0x12   :  { %485 = vmatpush3.msra.mxu1 %v176_v12 }
  0x13   :  { %486 = vmatprep.subr.mxu1 %v540_v1 }
  0x14   :  { %487 = vmatpush3.msra.mxu1 %v175_v13 }
  0xc9   :  { %v107_v15 = vpop.f32.mrf.mxu0 }
  0xca   :  { %v108_v16 = vadd.f32 %v434_v14, %v107_v15 }
  0xcb   :  { %v471_v17 = vpop.f32.mrf.mxu0 }
  0xcc   :  { %v121_v18 = vmul.f32 %v108_v16, %v108_v16  ;;  %v114_v19 = vsel %vm113_vm2, %v108_v16, 0.0 }
  0xcd   :  { %v115_v20 = vrot.slane %v114_v19, 4 }
  0xce   :  { %v122_v21 = vsel %vm113_vm2, %v121_v18, 0.0 }
  0xcf   :  { %v116_v22 = vadd.f32 %v115_v20, %v114_v19  ;;  %v123_v23 = vrot.slane %v122_v21, 4 }
  0xd1   :  { %v117_v24 = vrot.slane %v116_v22, 2  ;;  %v124_v25 = vadd.f32 %v123_v23, %v122_v21 }
  0xd3   :  { %v118_v26 = vadd.f32 %v117_v24, %v116_v22  ;;  %v125_v27 = vrot.slane %v124_v25, 2 }
  0xd5   :  { %v119_v28 = vrot.slane %v118_v26, 1  ;;  %v126_v29 = vadd.f32 %v125_v27, %v124_v25 }
  0xd7   :  { %v120_v30 = vadd.f32 %v119_v28, %v118_v26  ;;  %v127_v31 = vrot.slane %v126_v29, 1 }
  0xd9   :  { %v128_v32 = vadd.f32 %v127_v31, %v126_v29  ;;  %v129_v33 = vmul.f32 0.125, %v120_v30 }
  0xdb   :  { %v130_v34 = vmul.f32 0.125, %v128_v32  ;;  %v131_v35 = vmul.f32 %v129_v33, %v129_v33  ;;  %v134_v39 = vsub.f32 %v108_v16, %v129_v33 }
  0xdd   :  { %v132_v36 = vsub.f32 %v130_v34, %v131_v35 }
  0xdf   :  { %v133_v37 = vmax.f32 %v132_v36, 0.0 }
  0xe1   :  { %v135_v38 = vadd.f32 1e-05, %v133_v37  ;;  %v440_v37 = vld [vmem:[%s687_s4 + $0x1] ss:$0 sm:$0xff] }
  0xe3   :  { %502 = vrsqrt.f32 %v135_v38 }
  0xf0   :  { %v503_v40 = vpop.eup %502 }
  0xf1   :  { %v137_v42 = vmul.f32 %v503_v40, %v134_v39  ;;  %v441_v39 = vld [vmem:[%s687_s4 + $0x2] ss:$0 sm:$0xff] }
  0xf3   :  { %v142_v44 = vmul.f32 %v436_v41, %v137_v42 }
  0xf5   :  { %v147_v45 = vadd.f32 %v437_v43, %v142_v44 }
  0xf7   :  { %v149_v46 = vmul.f32 0.70710677, %v147_v45  ;;  %v148_v6 = vmul.f32 0.5, %v147_v45 }
  0xf9   :  { %v152_v47 = vand.u32 2147483647, %v149_v46  ;;  %vm150_vm3 = vcmp.ge.f32.partialorder %v149_v46, 0.0 }
  0xfa   :  { %v151_v4 = vsel %vm150_vm3, 1.0, %v542_v3 }
  0xfb   :  { %v153_v48 = vmul.f32 0.3275911, %v152_v47  ;;  %v166_v50 = vsub.f32 0.0, %v152_v47 }
  0xfd   :  { %v154_v49 = vadd.f32 1.0, %v153_v48  ;;  %v167_v51 = vmul.f32 %v166_v50, %v152_v47 }
  0xff   :  { %504 = vrcp.f32 %v154_v49  ;;  %v168_v54 = vmul.f32 1.442695, %v167_v51 }
 0x101   :  { %506 = vpow2.f32 %v168_v54 }
 0x10c   :  { %v505_v52 = vpop.eup %504 }
 0x10d   :  { %v157_v53 = vmul.f32 1.0614054, %v505_v52 }
 0x10e   :  { %v507_v63 = vpop.eup %506 }
 0x10f   :  { %v158_v55 = vadd.f32 -1.4531521, %v157_v53 }
 0x111   :  { %v159_v56 = vmul.f32 %v505_v52, %v158_v55 }
 0x113   :  { %v160_v57 = vadd.f32 1.4214138, %v159_v56 }
 0x115   :  { %v161_v58 = vmul.f32 %v505_v52, %v160_v57 }
 0x117   :  { %v162_v59 = vadd.f32 -0.28449672, %v161_v58 }
 0x119   :  { %v163_v60 = vmul.f32 %v505_v52, %v162_v59 }
 0x11b   :  { %v164_v61 = vadd.f32 0.2548296, %v163_v60 }
 0x11d   :  { %v165_v62 = vmul.f32 %v505_v52, %v164_v61 }
 0x11f   :  { %v170_v0 = vmul.f32 %v507_v63, %v165_v62 }
 0x121   :  { %v171_v2 = vsub.f32 1.0, %v170_v0 }
 0x123   :  { %v172_v5 = vmul.f32 %v171_v2, %v151_v4 }
 0x125   :  { %v173_v7 = vadd.f32 1.0, %v172_v5  ;;  %v442_v5 = vld [vmem:[%s689_s6] ss:$0 sm:$0xff]  ;;  %s518_s6 = scalar_lea.vmem %s427_s15, 128 }
 0x126   :  { %p519_p0 = scmp.ne.s32.totalorder %s427_s15, %s518_s6  ;;  %p524_p2 = scmp.lt.s32.totalorder %s518_s6, %s518_s6 }
 0x127   :  { %v174_v8 = vmul.f32 %v173_v7, %v148_v6 }
 0x128   :  { %p525_p3 = por %p524_p2, %p523_p1 }
 0x129   :  { %489 = vmatmul.mubr.msk.f32.vlgmr.msra.gmra.mxu1 %vm113_vm2, %v174_v8 }
 0x12a   :  { %p526_p4 = pnand %p525_p3, %p519_p0 }
 0x1e9   :  { %v257_v12 = vpop.f32.mrf.mxu1 }
 0x1ea   :  { %v258_v13 = vadd.f32 %v438_v11, %v257_v12 }
 0x1eb   :  { %v490_v14 = vpop.f32.mrf.mxu1 }
 0x1ec   :  { %v264_v15 = vsel %vm263_vm4, %v258_v13, 0.0  ;;  %v271_v16 = vmul.f32 %v258_v13, %v258_v13 }
 0x1ed   :  { %v265_v17 = vrot.slane %v264_v15, 4 }
 0x1ee   :  { %v272_v18 = vsel %vm263_vm4, %v271_v16, 0.0 }
 0x1ef   :  { %v266_v19 = vadd.f32 %v265_v17, %v264_v15  ;;  %v273_v20 = vrot.slane %v272_v18, 4 }
 0x1f1   :  { %v267_v21 = vrot.slane %v266_v19, 2  ;;  %v274_v22 = vadd.f32 %v273_v20, %v272_v18 }
 0x1f3   :  { %v268_v1 = vadd.f32 %v267_v21, %v266_v19  ;;  %v275_v23 = vrot.slane %v274_v22, 2 }
 0x1f5   :  { %v269_v24 = vrot.slane %v268_v1, 1  ;;  %v276_v25 = vadd.f32 %v275_v23, %v274_v22 }
 0x1f7   :  { %v270_v26 = vadd.f32 %v269_v24, %v268_v1  ;;  %v277_v27 = vrot.slane %v276_v25, 1 }
 0x1f9   :  { %v278_v28 = vadd.f32 %v277_v27, %v276_v25  ;;  %v279_v29 = vmul.f32 0.125, %v270_v26 }
 0x1fb   :  { %v280_v30 = vmul.f32 0.125, %v278_v28  ;;  %v281_v31 = vmul.f32 %v279_v29, %v279_v29  ;;  %v284_v35 = vsub.f32 %v258_v13, %v279_v29 }
 0x1fd   :  { %v282_v32 = vsub.f32 %v280_v30, %v281_v31 }
 0x1ff   :  { %v283_v33 = vmax.f32 %v282_v32, 0.0 }
 0x201   :  { %v285_v34 = vadd.f32 1e-05, %v283_v33 }
 0x203   :  { %508 = vrsqrt.f32 %v285_v34 }
 0x210   :  { %v509_v36 = vpop.eup %508 }
 0x211   :  { %v287_v38 = vmul.f32 %v509_v36, %v284_v35 }
 0x213   :  { %v292_v40 = vmul.f32 %v440_v37, %v287_v38 }
 0x215   :  { %v297_v41 = vadd.f32 %v441_v39, %v292_v40 }
 0x217   :  { %v299_v42 = vmul.f32 0.70710677, %v297_v41  ;;  %v298_v0 = vmul.f32 0.5, %v297_v41 }
 0x219   :  { %v302_v43 = vand.u32 2147483647, %v299_v42  ;;  %vm300_vm5 = vcmp.ge.f32.partialorder %v299_v42, 0.0 }
 0x21a   :  { %v301_v62 = vsel %vm300_vm5, 1.0, %v542_v3  ;;  %v407_v3 = vlaneseq }
 0x21b   :  { %v303_v44 = vmul.f32 0.3275911, %v302_v43  ;;  %v316_v46 = vsub.f32 0.0, %v302_v43 }
 0x21c   :  { %v408_v13 = vand.u32 127, %v407_v3 }
 0x21d   :  { %v304_v45 = vadd.f32 1.0, %v303_v44  ;;  %v317_v47 = vmul.f32 %v316_v46, %v302_v43 }
 0x21e   :  { %vm409_vm6 = vcmp.lt.s32.totalorder %v408_v13, 16 }
 0x21f   :  { %510 = vrcp.f32 %v304_v45  ;;  %v318_v49 = vmul.f32 1.442695, %v317_v47 }
 0x221   :  { %512 = vpow2.f32 %v318_v49 }
 0x22c   :  { %v511_v48 = vpop.eup %510 }
 0x22d   :  { %v307_v50 = vmul.f32 1.0614054, %v511_v48 }
 0x22e   :  { %v513_v59 = vpop.eup %512 }
 0x22f   :  { %v308_v51 = vadd.f32 -1.4531521, %v307_v50 }
 0x231   :  { %v309_v52 = vmul.f32 %v511_v48, %v308_v51 }
 0x233   :  { %v310_v53 = vadd.f32 1.4214138, %v309_v52 }
 0x235   :  { %v311_v54 = vmul.f32 %v511_v48, %v310_v53 }
 0x237   :  { %v312_v55 = vadd.f32 -0.28449672, %v311_v54 }
 0x239   :  { %v313_v56 = vmul.f32 %v511_v48, %v312_v55 }
 0x23b   :  { %v314_v57 = vadd.f32 0.2548296, %v313_v56 }
 0x23d   :  { %v315_v58 = vmul.f32 %v511_v48, %v314_v57 }
 0x23f   :  { %v320_v60 = vmul.f32 %v513_v59, %v315_v58 }
 0x241   :  { %v321_v61 = vsub.f32 1.0, %v320_v60 }
 0x243   :  { %v322_v63 = vmul.f32 %v321_v61, %v301_v62 }
 0x245   :  { %v323_v2 = vadd.f32 1.0, %v322_v63 }
 0x247   :  { %v324_v4 = vmul.f32 %v323_v2, %v298_v0 }
 0x249   :  { %496 = vmatmul.mubr.msk.f32.vlgmr.msra.gmra.mxu0 %vm263_vm4, %v324_v4 }
 0x309   :  { %v403_v6 = vpop.f32.mrf.mxu0 }
 0x30a   :  { %v404_v7 = vadd.f32 %v442_v5, %v403_v6 }
 0x30b   :  { %v497_v8 = vpop.f32.mrf.mxu0 }
 0x30c   :  { %v411_v9 = vmin.f32 %v404_v7, 20.0  ;;  %vm410_vm7 = vcmp.gt.f32.partialorder %v404_v7, 20.0 }
 0x30e   :  { %v412_v10 = vmul.f32 1.442695, %v411_v9 }
 0x310   :  { %514 = vpow2.f32 %v412_v10 }
 0x31d   :  { %v515_v11 = vpop.eup %514 }
 0x31e   :  { %v414_v12 = vadd.f32 1.0, %v515_v11 }
 0x320   :  { %516 = vlog2.f32 %v414_v12 }
 0x32d   :  { %v517_v14 = vpop.eup %516 }
 0x32e   :  { %v416_v15 = vmul.f32 0.6931472, %v517_v14 }
 0x330   :  { %v417_v16 = vsel %vm410_vm7, %v404_v7, %v416_v15 }
 0x331   :  { %v418_v17 = vsel %vm409_vm6, %v404_v7, %v417_v16 }
 0x332   :  { %419 = vst.msk [vmem:[#allocation2] sm:$0xff] %vm37_vm1, %v418_v17 }
 0x333   :  { %529 = shalt.err (!%p526_p4)
}
 0x334   :  { %429 = dma.vmem_to_hbm [thread:$0]  %s427_s15, 128, %s690_s7, [#allocation3]  }
 0x335   :  { %538 = dma.done.wait [#allocation3], 128  }
 0x336   :  { %539 = vsyncadd [#allocation3], 4294967168 }
 0x337   :  { %433 = vsyncpa [#allocation3], 1 }

</bundles_post_ra>
